<compile_context>
chip_gen: v7x
topology: tpu7x:2x2x1
jax: 0.10.0
libtpu: 0.0.40
codegen_flags: <defaults>
</compile_context>

<pallas_src>
import math
import functools

import jax
import jax.numpy as jnp
from jax import lax
from jax.experimental import pallas as pl
from jax.experimental.pallas import tpu as pltpu

# ----------------------------- configuration --------------------------------
D_PRJH = 32        # args.d_prjh  (hidden size)
FF_SIZE = 128      # args.ff_size (FFN mid size)
LN_EPS = 1e-6
BATCH = 8          # example batch
SEQ = 32           # example sequence length  (BATCH*SEQ = 256 rows)


# ------------------------------- kernel -------------------------------------
def _layernorm_cols(x, gamma, beta):
    """LayerNorm over axis 0 (feature axis) of a (D, rows) tile.

    One-pass statistics: sum(x) and sum(x*x) are independent reductions, so
    the two XLU reduces are not serially data-dependent.
    """
    inv_d = 1.0 / x.shape[0]
    mean = jnp.sum(x, axis=0, keepdims=True) * inv_d          # (1, rows)
    ex2 = jnp.sum(x * x, axis=0, keepdims=True) * inv_d       # (1, rows)
    var = ex2 - mean * mean
    return gamma * (x - mean) * lax.rsqrt(var + LN_EPS) + beta


def ff_and_norm_kernel(
    x_ref,                       # (D, tile_rows)      activation tile (transposed)
    w1_ref, w2_ref,              # (FF, D), (D, FF)    nn.Linear weights (out, in)
    b1_ref, b2_ref,              # (FF, 1), (D, 1)
    g1_ref, be1_ref,             # (D, 1)              norm1 affine
    g2_ref, be2_ref,             # (D, 1)              norm2 affine
    o_ref,                       # (D, tile_rows)
    *, bf16_mxu,
):
    x = x_ref[...].astype(jnp.float32)                        # (D, R)

    # x = norm1(x)
    xn = _layernorm_cols(x, g1_ref[...], be1_ref[...])        # (D, R) f32

    mxu_dt = jnp.bfloat16 if bf16_mxu else jnp.float32

    # FFN: Linear -> ReLU -> (dropout: identity) -> Linear, f32 accumulation.
    h = jnp.dot(w1_ref[...].astype(mxu_dt), xn.astype(mxu_dt),
                preferred_element_type=jnp.float32) + b1_ref[...]   # (FF, R)
    h = jnp.maximum(h, 0.0)
    f = jnp.dot(w2_ref[...].astype(mxu_dt), h.astype(mxu_dt),
                preferred_element_type=jnp.float32) + b2_ref[...]   # (D, R)

    # x = norm2(x + dropout2(ffn(x)))   (residual uses the post-norm1 x)
    y = _layernorm_cols(xn + f, g2_ref[...], be2_ref[...])

    o_ref[...] = y.astype(o_ref.dtype)


# ------------------------------- wrapper -------------------------------------
def _num_row_tiles(n_rows):
    """1 grid step on single-TC chips; 2 steps (one per TensorCore) on v7x."""
    try:
        kind = jax.devices()[0].device_kind.lower()
    except Exception:
        return 1
    if ("v7" in kind or "7x" in kind) and n_rows % 256 == 0:
        return 2
    return 1


def ff_and_norm_forward(x, params, *, bf16_mxu=True):
    """x: (..., D_PRJH) float32.  Weights stored (out, in) like nn.Linear."""
    lead_shape = x.shape[:-1]
    d = x.shape[-1]
    xr = x.reshape(-1, d)
    n_rows = xr.shape[0]

    n_tiles = _num_row_tiles(n_rows)
    tile_rows = n_rows // n_tiles

    # Lane-dense layout: features on sublanes, rows on lanes.
    xt = xr.T                                   # (D, n_rows)

    args = (
        xt,
        params["w1"], params["w2"],
        params["b1"], params["b2"],
        params["ln1_g"], params["ln1_b"],
        params["ln2_g"], params["ln2_b"],
    )

    # Activations: tiled over the (lane) row axis.  Parameters: full-array
    # blocks with a constant index_map -> fetched once, VMEM-resident.
    in_specs = [pl.BlockSpec((d, tile_rows), lambda i: (0, i))]
    in_specs += [pl.BlockSpec(a.shape, lambda i: (0, 0)) for a in args[1:]]

    out_t = pl.pallas_call(
        functools.partial(ff_and_norm_kernel, bf16_mxu=bf16_mxu),
        out_shape=jax.ShapeDtypeStruct((d, n_rows), x.dtype),
        grid=(n_tiles,),
        in_specs=in_specs,
        out_specs=pl.BlockSpec((d, tile_rows), lambda i: (0, i)),
        compiler_params=pltpu.CompilerParams(
            dimension_semantics=("parallel",),   # megacore sharding on v7x
        ),
    )(*args)

    return out_t.T.reshape(*lead_shape, d)


# ---------------------------- pure-JAX reference -----------------------------
def ff_and_norm_reference(x, params):
    def ln(v, g, b):
        mu = jnp.mean(v, axis=-1, keepdims=True)
        var = jnp.mean((v - mu) ** 2, axis=-1, keepdims=True)
        return g.reshape(1, -1) * (v - mu) / jnp.sqrt(var + LN_EPS) + b.reshape(1, -1)

    d = x.shape[-1]
    xr = x.reshape(-1, d)
    xn = ln(xr, params["ln1_g"], params["ln1_b"])
    h = jnp.maximum(
        jnp.dot(xn, params["w1"].T, precision=lax.Precision.HIGHEST)
        + params["b1"].reshape(1, -1), 0.0)
    f = jnp.dot(h, params["w2"].T, precision=lax.Precision.HIGHEST) \
        + params["b2"].reshape(1, -1)
    y = ln(xn + f, params["ln2_g"], params["ln2_b"])
    return y.reshape(x.shape)


# --------------------------------- main ---------------------------------------
def _init_params(key, d, ff):
    ks = jax.random.split(key, 8)

    def lin(kw, kb, fan_in, fan_out):
        s = 1.0 / math.sqrt(fan_in)
        w = jax.random.uniform(kw, (fan_out, fan_in), jnp.float32, -s, s)  # (out, in)
        b = jax.random.uniform(kb, (fan_out, 1), jnp.float32, -s, s)
        return w, b

    w1, b1 = lin(ks[0], ks[1], d, ff)
    w2, b2 = lin(ks[2], ks[3], ff, d)
    return {
        "w1": w1, "b1": b1,
        "w2": w2, "b2": b2,
        # non-trivial LN affine params to actually exercise the math
        "ln1_g": 1.0 + 0.1 * jax.random.normal(ks[4], (d, 1), jnp.float32),
        "ln1_b": 0.1 * jax.random.normal(ks[5], (d, 1), jnp.float32),
        "ln2_g": 1.0 + 0.1 * jax.random.normal(ks[6], (d, 1), jnp.float32),
        "ln2_b": 0.1 * jax.random.normal(ks[7], (d, 1), jnp.float32),
    }


if __name__ == "__main__":
    key = jax.random.PRNGKey(0)
    k_x, k_p = jax.random.split(key)
    x = jax.random.normal(k_x, (BATCH, SEQ, D_PRJH), jnp.float32)
    params = _init_params(k_p, D_PRJH, FF_SIZE)

    ref = jax.block_until_ready(ff_and_norm_reference(x, params))

    # Strict numeric check of the kernel math (f32 MXU inputs).
    out_f32 = jax.block_until_ready(ff_and_norm_forward(x, params, bf16_mxu=False))
    assert out_f32.shape == x.shape
    assert jnp.allclose(out_f32, ref, atol=1e-4, rtol=1e-4), (
        f"f32 path max abs err = {jnp.max(jnp.abs(out_f32 - ref))}"
    )

    # Perf-default path: bf16 MXU inputs, f32 accumulation.
    out = jax.block_until_ready(ff_and_norm_forward(x, params, bf16_mxu=True))
    assert out.shape == x.shape
    assert jnp.allclose(out, ref, atol=3e-2, rtol=3e-2), (
        f"bf16-MXU path max abs err = {jnp.max(jnp.abs(out - ref))}"
    )

    print("KERNEL_OK")
</pallas_src>

<mosaic_0001>
module attributes {stable_mosaic.version = 11 : i64} {
  func.func @ff_and_norm_kernel(%arg0: i32, %arg1: memref<32x256xf32, #tpu.memory_space<vmem>>, %arg2: memref<128x32xf32, #tpu.memory_space<vmem>>, %arg3: memref<32x128xf32, #tpu.memory_space<vmem>>, %arg4: memref<128x1xf32, #tpu.memory_space<vmem>>, %arg5: memref<32x1xf32, #tpu.memory_space<vmem>>, %arg6: memref<32x1xf32, #tpu.memory_space<vmem>>, %arg7: memref<32x1xf32, #tpu.memory_space<vmem>>, %arg8: memref<32x1xf32, #tpu.memory_space<vmem>>, %arg9: memref<32x1xf32, #tpu.memory_space<vmem>>, %arg10: memref<32x256xf32, #tpu.memory_space<vmem>>) attributes {dimension_semantics = [#tpu.dimension_semantics<parallel>], iteration_bounds = array<i64: 1>, scalar_prefetch = 0 : i64, scratch_operands = 0 : i64, tpu.core_type = #tpu.core_type<tc>, window_params = [{transform_indices = @transform_0, window_bounds = array<i64: 32, 256>}, {pipeline_mode = #tpu.pipeline_mode<synchronous>, transform_indices = @transform_1, window_bounds = array<i64: 128, 32>}, {pipeline_mode = #tpu.pipeline_mode<synchronous>, transform_indices = @transform_2, window_bounds = array<i64: 32, 128>}, {pipeline_mode = #tpu.pipeline_mode<synchronous>, transform_indices = @transform_3, window_bounds = array<i64: 128, 1>}, {pipeline_mode = #tpu.pipeline_mode<synchronous>, transform_indices = @transform_4, window_bounds = array<i64: 32, 1>}, {pipeline_mode = #tpu.pipeline_mode<synchronous>, transform_indices = @transform_5, window_bounds = array<i64: 32, 1>}, {pipeline_mode = #tpu.pipeline_mode<synchronous>, transform_indices = @transform_6, window_bounds = array<i64: 32, 1>}, {pipeline_mode = #tpu.pipeline_mode<synchronous>, transform_indices = @transform_7, window_bounds = array<i64: 32, 1>}, {pipeline_mode = #tpu.pipeline_mode<synchronous>, transform_indices = @transform_8, window_bounds = array<i64: 32, 1>}, {transform_indices = @transform_9, window_bounds = array<i64: 32, 256>}]} {
    %c0 = arith.constant 0 : index
    %c0_0 = arith.constant 0 : index
    %0 = vector.load %arg1[%c0, %c0_0] : memref<32x256xf32, #tpu.memory_space<vmem>>, vector<32x256xf32>
    %c0_1 = arith.constant 0 : index
    %c0_2 = arith.constant 0 : index
    %1 = vector.load %arg6[%c0_1, %c0_2] : memref<32x1xf32, #tpu.memory_space<vmem>>, vector<32x1xf32>
    %c0_3 = arith.constant 0 : index
    %c0_4 = arith.constant 0 : index
    %2 = vector.load %arg7[%c0_3, %c0_4] : memref<32x1xf32, #tpu.memory_space<vmem>>, vector<32x1xf32>
    %cst = arith.constant dense<0.000000e+00> : vector<256xf32>
    %3 = vector.multi_reduction <add>, %0, %cst [0] : vector<32x256xf32> to vector<256xf32>
    %4 = vector.shape_cast %3 : vector<256xf32> to vector<1x256xf32>
    %cst_5 = arith.constant 3.125000e-02 : f32
    %5 = vector.broadcast %cst_5 : f32 to vector<1x256xf32>
    %6 = arith.mulf %4, %5 : vector<1x256xf32>
    %7 = arith.mulf %0, %0 : vector<32x256xf32>
    %cst_6 = arith.constant dense<0.000000e+00> : vector<256xf32>
    %8 = vector.multi_reduction <add>, %7, %cst_6 [0] : vector<32x256xf32> to vector<256xf32>
    %9 = vector.shape_cast %8 : vector<256xf32> to vector<1x256xf32>
    %cst_7 = arith.constant 3.125000e-02 : f32
    %10 = vector.broadcast %cst_7 : f32 to vector<1x256xf32>
    %11 = arith.mulf %9, %10 : vector<1x256xf32>
    %12 = arith.mulf %6, %6 : vector<1x256xf32>
    %13 = arith.subf %11, %12 : vector<1x256xf32>
    %14 = vector.broadcast %6 : vector<1x256xf32> to vector<32x256xf32>
    %15 = arith.subf %0, %14 : vector<32x256xf32>
    %16 = vector.broadcast %1 : vector<32x1xf32> to vector<32x256xf32>
    %17 = arith.mulf %16, %15 : vector<32x256xf32>
    %cst_8 = arith.constant 9.99999997E-7 : f32
    %18 = vector.broadcast %cst_8 : f32 to vector<1x256xf32>
    %19 = arith.addf %13, %18 : vector<1x256xf32>
    %20 = math.rsqrt %19 : vector<1x256xf32>
    %21 = vector.broadcast %20 : vector<1x256xf32> to vector<32x256xf32>
    %22 = arith.mulf %17, %21 : vector<32x256xf32>
    %23 = vector.broadcast %2 : vector<32x1xf32> to vector<32x256xf32>
    %24 = arith.addf %22, %23 : vector<32x256xf32>
    %c0_9 = arith.constant 0 : index
    %c0_10 = arith.constant 0 : index
    %25 = vector.load %arg2[%c0_9, %c0_10] : memref<128x32xf32, #tpu.memory_space<vmem>>, vector<128x32xf32>
    %cst_11 = arith.constant dense<0.000000e+00> : vector<128x256xf32>
    %26 = tpu.matmul %25, %24, %cst_11 {dimension_numbers = #tpu.dot_dimension_numbers<[1], [0], [0], [1], [0, 0, 1, 1], [], []>} : vector<128x32xf32>, vector<32x256xf32>, vector<128x256xf32> -> vector<128x256xf32>
    %c0_12 = arith.constant 0 : index
    %c0_13 = arith.constant 0 : index
    %27 = vector.load %arg4[%c0_12, %c0_13] : memref<128x1xf32, #tpu.memory_space<vmem>>, vector<128x1xf32>
    %28 = vector.broadcast %27 : vector<128x1xf32> to vector<128x256xf32>
    %29 = arith.addf %26, %28 : vector<128x256xf32>
    %cst_14 = arith.constant 0.000000e+00 : f32
    %30 = vector.broadcast %cst_14 : f32 to vector<128x256xf32>
    %31 = arith.maximumf %29, %30 : vector<128x256xf32>
    %c0_15 = arith.constant 0 : index
    %c0_16 = arith.constant 0 : index
    %32 = vector.load %arg3[%c0_15, %c0_16] : memref<32x128xf32, #tpu.memory_space<vmem>>, vector<32x128xf32>
    %cst_17 = arith.constant dense<0.000000e+00> : vector<32x256xf32>
    %33 = tpu.matmul %32, %31, %cst_17 {dimension_numbers = #tpu.dot_dimension_numbers<[1], [0], [0], [1], [0, 0, 1, 1], [], []>} : vector<32x128xf32>, vector<128x256xf32>, vector<32x256xf32> -> vector<32x256xf32>
    %c0_18 = arith.constant 0 : index
    %c0_19 = arith.constant 0 : index
    %34 = vector.load %arg5[%c0_18, %c0_19] : memref<32x1xf32, #tpu.memory_space<vmem>>, vector<32x1xf32>
    %35 = vector.broadcast %34 : vector<32x1xf32> to vector<32x256xf32>
    %36 = arith.addf %33, %35 : vector<32x256xf32>
    %37 = arith.addf %24, %36 : vector<32x256xf32>
    %c0_20 = arith.constant 0 : index
    %c0_21 = arith.constant 0 : index
    %38 = vector.load %arg8[%c0_20, %c0_21] : memref<32x1xf32, #tpu.memory_space<vmem>>, vector<32x1xf32>
    %c0_22 = arith.constant 0 : index
    %c0_23 = arith.constant 0 : index
    %39 = vector.load %arg9[%c0_22, %c0_23] : memref<32x1xf32, #tpu.memory_space<vmem>>, vector<32x1xf32>
    %cst_24 = arith.constant dense<0.000000e+00> : vector<256xf32>
    %40 = vector.multi_reduction <add>, %37, %cst_24 [0] : vector<32x256xf32> to vector<256xf32>
    %41 = vector.shape_cast %40 : vector<256xf32> to vector<1x256xf32>
    %cst_25 = arith.constant 3.125000e-02 : f32
    %42 = vector.broadcast %cst_25 : f32 to vector<1x256xf32>
    %43 = arith.mulf %41, %42 : vector<1x256xf32>
    %44 = arith.mulf %37, %37 : vector<32x256xf32>
    %cst_26 = arith.constant dense<0.000000e+00> : vector<256xf32>
    %45 = vector.multi_reduction <add>, %44, %cst_26 [0] : vector<32x256xf32> to vector<256xf32>
    %46 = vector.shape_cast %45 : vector<256xf32> to vector<1x256xf32>
    %cst_27 = arith.constant 3.125000e-02 : f32
    %47 = vector.broadcast %cst_27 : f32 to vector<1x256xf32>
    %48 = arith.mulf %46, %47 : vector<1x256xf32>
    %49 = arith.mulf %43, %43 : vector<1x256xf32>
    %50 = arith.subf %48, %49 : vector<1x256xf32>
    %51 = vector.broadcast %43 : vector<1x256xf32> to vector<32x256xf32>
    %52 = arith.subf %37, %51 : vector<32x256xf32>
    %53 = vector.broadcast %38 : vector<32x1xf32> to vector<32x256xf32>
    %54 = arith.mulf %53, %52 : vector<32x256xf32>
    %cst_28 = arith.constant 9.99999997E-7 : f32
    %55 = vector.broadcast %cst_28 : f32 to vector<1x256xf32>
    %56 = arith.addf %50, %55 : vector<1x256xf32>
    %57 = math.rsqrt %56 : vector<1x256xf32>
    %58 = vector.broadcast %57 : vector<1x256xf32> to vector<32x256xf32>
    %59 = arith.mulf %54, %58 : vector<32x256xf32>
    %60 = vector.broadcast %39 : vector<32x1xf32> to vector<32x256xf32>
    %61 = arith.addf %59, %60 : vector<32x256xf32>
    %c0_29 = arith.constant 0 : index
    %c0_30 = arith.constant 0 : index
    %62 = vector.load %arg10[%c0_29, %c0_30] : memref<32x256xf32, #tpu.memory_space<vmem>>, vector<32x256xf32>
    tpu.vector_store %arg10[%c0_29, %c0_30], %61 {strides = array<i32>} : memref<32x256xf32, #tpu.memory_space<vmem>>, vector<32x256xf32>,
    return
  }
  func.func @transform_0(%arg0: i32) -> (i32, i32) {
    %c0_i32 = arith.constant 0 : i32
    %c0_i32_0 = arith.constant 0 : i32
    return %c0_i32, %arg0 : i32, i32
  }
  func.func @transform_1(%arg0: i32) -> (i32, i32) {
    %c0_i32 = arith.constant 0 : i32
    %c0_i32_0 = arith.constant 0 : i32
    %c0_i32_1 = arith.constant 0 : i32
    return %c0_i32, %c0_i32_0 : i32, i32
  }
  func.func @transform_2(%arg0: i32) -> (i32, i32) {
    %c0_i32 = arith.constant 0 : i32
    %c0_i32_0 = arith.constant 0 : i32
    %c0_i32_1 = arith.constant 0 : i32
    return %c0_i32, %c0_i32_0 : i32, i32
  }
  func.func @transform_3(%arg0: i32) -> (i32, i32) {
    %c0_i32 = arith.constant 0 : i32
    %c0_i32_0 = arith.constant 0 : i32
    %c0_i32_1 = arith.constant 0 : i32
    return %c0_i32, %c0_i32_0 : i32, i32
  }
  func.func @transform_4(%arg0: i32) -> (i32, i32) {
    %c0_i32 = arith.constant 0 : i32
    %c0_i32_0 = arith.constant 0 : i32
    %c0_i32_1 = arith.constant 0 : i32
    return %c0_i32, %c0_i32_0 : i32, i32
  }
  func.func @transform_5(%arg0: i32) -> (i32, i32) {
    %c0_i32 = arith.constant 0 : i32
    %c0_i32_0 = arith.constant 0 : i32
    %c0_i32_1 = arith.constant 0 : i32
    return %c0_i32, %c0_i32_0 : i32, i32
  }
  func.func @transform_6(%arg0: i32) -> (i32, i32) {
    %c0_i32 = arith.constant 0 : i32
    %c0_i32_0 = arith.constant 0 : i32
    %c0_i32_1 = arith.constant 0 : i32
    return %c0_i32, %c0_i32_0 : i32, i32
  }
  func.func @transform_7(%arg0: i32) -> (i32, i32) {
    %c0_i32 = arith.constant 0 : i32
    %c0_i32_0 = arith.constant 0 : i32
    %c0_i32_1 = arith.constant 0 : i32
    return %c0_i32, %c0_i32_0 : i32, i32
  }
  func.func @transform_8(%arg0: i32) -> (i32, i32) {
    %c0_i32 = arith.constant 0 : i32
    %c0_i32_0 = arith.constant 0 : i32
    %c0_i32_1 = arith.constant 0 : i32
    return %c0_i32, %c0_i32_0 : i32, i32
  }
  func.func @transform_9(%arg0: i32) -> (i32, i32) {
    %c0_i32 = arith.constant 0 : i32
    %c0_i32_0 = arith.constant 0 : i32
    return %c0_i32, %arg0 : i32, i32
  }
}

</mosaic_0001>

<bundles_post_ra>
// kernel: tpu_custom_call.1
= control target key start
LH: loop header
LB: loop body
LE: loop exit
PB: predicated region body
PF: predicated region fallthrough
CT: control target
= control target key end

     0   :  { %v911_v2 = vmov 0   ;;  %s1334_s0 = inlined_call_operand.vmem [shape: f32[32,256], index: 0, kind: input, shape index: {}]   ;;  %s1335_s1 = inlined_call_operand.vmem [shape: f32[128,32], index: 1, kind: input, shape index: {}]   ;;  %s1336_s2 = inlined_call_operand.vmem [shape: f32[32,128], index: 2, kind: input, shape index: {}]   ;;  %s1337_s3 = inlined_call_operand.vmem [shape: f32[128,1], index: 3, kind: input, shape index: {}]   ;;  %s1338_s4 = inlined_call_operand.vmem [shape: f32[32,1], index: 4, kind: input, shape index: {}]   ;;  %s1339_s5 = inlined_call_operand.vmem [shape: f32[32,1], index: 5, kind: input, shape index: {}]   ;;  %s1340_s6 = inlined_call_operand.vmem [shape: f32[32,1], index: 6, kind: input, shape index: {}]   ;;  %s1341_s7 = inlined_call_operand.vmem [shape: f32[32,1], index: 7, kind: input, shape index: {}]   ;;  %s1342_s8 = inlined_call_operand.vmem [shape: f32[32,1], index: 8, kind: input, shape index: {}]   ;;  %s1343_s9 = inlined_call_operand.hbm [shape: f32[32,256], index: 9, kind: output, shape index: {}]  }
   0x1   :  { %v43_v0 = vld [vmem:[%s1339_s5 + $0x10] sm:$0xff]  ;;  %v41_v1 = vld [vmem:[%s1339_s5] sm:$0xff]  ;;  %878 = vset.pattern.permute.xlu1 %v911_v2  ;;  %877 = vset.pattern.permute.xlu0 %v911_v2  ;;  %v44_v3 = vld [vmem:[%s1339_s5 + $0x18] sm:$0xff] }
   0x2   :  { %121 = vperm.xlu1 %878, %v43_v0   ;;  %111 = vperm.xlu0 %877, %v41_v1   ;;  %v42_v4 = vld [vmem:[%s1339_s5 + $0x8] sm:$0xff]  ;;  %v45_v6 = vld [vmem:[%s1340_s6] sm:$0xff]  ;;  %v48_v7 = vld [vmem:[%s1340_s6 + $0x18] sm:$0xff] }
   0x3   :  { %v46_v5 = vld [vmem:[%s1340_s6 + $0x8] sm:$0xff]  ;;  %v47_v8 = vld [vmem:[%s1340_s6 + $0x10] sm:$0xff] }
   0x6   :  { %126 = vperm.xlu1 %878, %v44_v3   ;;  %116 = vperm.xlu0 %877, %v42_v4  }
   0xa   :  { %156 = vperm.xlu1 %878, %v46_v5   ;;  %151 = vperm.xlu0 %877, %v45_v6  }
   0xe   :  { %166 = vperm.xlu1 %878, %v48_v7   ;;  %161 = vperm.xlu0 %877, %v47_v8  }
   0xf   :  { %14 = vsyncpa [#allocation3], 0  ;;  %v194_v9 = vld [vmem:[%s1337_s3 + $0x8] sm:$0xff]  ;;  %v193_v10 = vld [vmem:[%s1337_s3] sm:$0xff]  ;;  %v912_v13 = vmov 0.0   ;;  %vm289_vm0 = vcmask 261120  }
  0x10   :  { %v196_v11 = vld [vmem:[%s1337_s3 + $0x18] sm:$0xff]  ;;  %v195_v12 = vld [vmem:[%s1337_s3 + $0x10] sm:$0xff]  ;;  %402 = vmatprep.mubr.f32.mxu0 %v912_v13  ;;  %623 = vmatprep.mubr.f32.mxu1 %v912_v13  ;;  %v198_v14 = vld [vmem:[%s1337_s3 + $0x28] sm:$0xff] }
  0x11   :  { %v197_v15 = vld [vmem:[%s1337_s3 + $0x20] sm:$0xff]  ;;  %v200_v16 = vld [vmem:[%s1337_s3 + $0x38] sm:$0xff]  ;;  %v199_v17 = vld [vmem:[%s1337_s3 + $0x30] sm:$0xff] }
  0x12   :  { %216 = vperm.xlu1 %878, %v194_v9   ;;  %211 = vperm.xlu0 %877, %v193_v10   ;;  %v202_v18 = vld [vmem:[%s1337_s3 + $0x48] sm:$0xff]  ;;  %v201_v19 = vld [vmem:[%s1337_s3 + $0x40] sm:$0xff]  ;;  %v204_v20 = vld [vmem:[%s1337_s3 + $0x58] sm:$0xff] }
  0x13   :  { %v203_v21 = vld [vmem:[%s1337_s3 + $0x50] sm:$0xff]  ;;  %v206_v22 = vld [vmem:[%s1337_s3 + $0x68] sm:$0xff]  ;;  %v205_v23 = vld [vmem:[%s1337_s3 + $0x60] sm:$0xff] }
  0x14   :  { %v208_v24 = vld [vmem:[%s1337_s3 + $0x78] sm:$0xff]  ;;  %v207_v25 = vld [vmem:[%s1337_s3 + $0x70] sm:$0xff]  ;;  %v536_v26 = vld [vmem:[%s1338_s4 + $0x8] sm:$0xff] }
  0x15   :  { %v535_v27 = vld [vmem:[%s1338_s4] sm:$0xff]  ;;  %v538_v28 = vld [vmem:[%s1338_s4 + $0x18] sm:$0xff]  ;;  %v537_v29 = vld [vmem:[%s1338_s4 + $0x10] sm:$0xff] }
  0x16   :  { %226 = vperm.xlu1 %878, %v196_v11   ;;  %221 = vperm.xlu0 %877, %v195_v12   ;;  %v657_v30 = vld [vmem:[%s1341_s7 + $0x8] sm:$0xff]  ;;  %v656_v31 = vld [vmem:[%s1341_s7] sm:$0xff]  ;;  %v659_v32 = vld [vmem:[%s1341_s7 + $0x18] sm:$0xff] }
  0x17   :  { %v658_v33 = vld [vmem:[%s1341_s7 + $0x10] sm:$0xff]  ;;  %v661_v34 = vld [vmem:[%s1342_s8 + $0x8] sm:$0xff]  ;;  %v660_v35 = vld [vmem:[%s1342_s8] sm:$0xff] }
  0x18   :  { %v663_v36 = vld [vmem:[%s1342_s8 + $0x18] sm:$0xff]  ;;  %v1076_v37 = vld [vmem:[%s1334_s0] sm:$0xff]  ;;  %v1081_v38 = vld [vmem:[%s1334_s0 + $0x10] sm:$0xff] }
  0x19   :  { %v662_v39 = vld [vmem:[%s1342_s8 + $0x10] sm:$0xff]  ;;  %v1089_v40 = vld [vmem:[%s1334_s0 + $0x8] sm:$0xff]  ;;  %v1094_v41 = vld [vmem:[%s1334_s0 + $0x18] sm:$0xff]  ;;  %v49_v42 = vadd.f32 %v1081_v38, %v1076_v37  ;;  %v69_v43 = vmul.f32 %v1076_v37, %v1076_v37  ;;  %v71_v44 = vmul.f32 %v1081_v38, %v1081_v38 }
  0x1a   :  { %236 = vperm.xlu1 %878, %v198_v14   ;;  %231 = vperm.xlu0 %877, %v197_v15   ;;  %v1105_v45 = vld [vmem:[%s1334_s0 + $0x20] sm:$0xff]  ;;  %v58_v46 = vadd.f32 %v1094_v41, %v1089_v40  ;;  %v70_v47 = vmul.f32 %v1089_v40, %v1089_v40  ;;  %v72_v48 = vmul.f32 %v1094_v41, %v1094_v41  ;;  %v1116_v49 = vld [vmem:[%s1334_s0 + $0x28] sm:$0xff]  ;;  %v1124_v53 = vld [vmem:[%s1334_s0 + $0x30] sm:$0xff] }
  0x1b   :  { %v50_v50 = vadd.f32 %v49_v42, %v1105_v45  ;;  %v73_v51 = vmul.f32 %v1105_v45, %v1105_v45  ;;  %v77_v52 = vadd.f32 %v71_v44, %v69_v43  ;;  %v74_v55 = vmul.f32 %v1116_v49, %v1116_v49  ;;  %v1132_v57 = vld [vmem:[%s1334_s0 + $0x38] sm:$0xff] }
  0x1c   :  { %v59_v54 = vadd.f32 %v58_v46, %v1116_v49  ;;  %v86_v56 = vadd.f32 %v72_v48, %v70_v47  ;;  %v75_v59 = vmul.f32 %v1124_v53, %v1124_v53  ;;  %v76_v62 = vmul.f32 %v1132_v57, %v1132_v57 }
  0x1d   :  { %v51_v58 = vadd.f32 %v50_v50, %v1124_v53  ;;  %v78_v60 = vadd.f32 %v77_v52, %v73_v51 }
  0x1e   :  { %246 = vperm.xlu1 %878, %v200_v16   ;;  %241 = vperm.xlu0 %877, %v199_v17   ;;  %v60_v61 = vadd.f32 %v59_v54, %v1132_v57  ;;  %v87_v63 = vadd.f32 %v86_v56, %v74_v55 }
  0x1f   :  { %v52_v0 = vrot.slane %v51_v58, 4  ;;  %v79_v1 = vadd.f32 %v78_v60, %v75_v59 }
  0x20   :  { %v61_v2 = vrot.slane %v60_v61, 4  ;;  %v88_v3 = vadd.f32 %v87_v63, %v76_v62 }
  0x21   :  { %v53_v4 = vadd.f32 %v52_v0, %v51_v58  ;;  %v80_v5 = vrot.slane %v79_v1, 4 }
  0x22   :  { %256 = vperm.xlu1 %878, %v202_v18   ;;  %251 = vperm.xlu0 %877, %v201_v19   ;;  %v62_v6 = vadd.f32 %v61_v2, %v60_v61  ;;  %v89_v7 = vrot.slane %v88_v3, 4 }
  0x23   :  { %v54_v8 = vrot.slane %v53_v4, 2  ;;  %v81_v9 = vadd.f32 %v80_v5, %v79_v1 }
  0x24   :  { %v63_v10 = vrot.slane %v62_v6, 2  ;;  %v90_v11 = vadd.f32 %v89_v7, %v88_v3 }
  0x25   :  { %v55_v12 = vadd.f32 %v54_v8, %v53_v4  ;;  %v82_v14 = vrot.slane %v81_v9, 2 }
  0x26   :  { %266 = vperm.xlu1 %878, %v204_v20   ;;  %261 = vperm.xlu0 %877, %v203_v21   ;;  %v64_v15 = vadd.f32 %v63_v10, %v62_v6  ;;  %v91_v16 = vrot.slane %v90_v11, 2 }
  0x27   :  { %v56_v17 = vrot.slane %v55_v12, 1  ;;  %v83_v18 = vadd.f32 %v82_v14, %v81_v9 }
  0x28   :  { %v65_v19 = vrot.slane %v64_v15, 1  ;;  %v92_v20 = vadd.f32 %v91_v16, %v90_v11 }
  0x29   :  { %v57_v21 = vadd.f32 %v56_v17, %v55_v12 }
  0x2a   :  { %276 = vperm.xlu1 %878, %v206_v22   ;;  %271 = vperm.xlu0 %877, %v205_v23   ;;  %v84_v22 = vrot.slane %v83_v18, 1  ;;  %v66_v23 = vadd.f32 %v65_v19, %v64_v15 }
  0x2e   :  { %286 = vperm.xlu1 %878, %v208_v24   ;;  %281 = vperm.xlu0 %877, %v207_v25   ;;  %v93_v24 = vrot.slane %v92_v20, 1  ;;  %v67_v25 = vmul.f32 0.03125, %v57_v21  ;;  %v178_v21 = vld [vmem:[%s1335_s1 + $0x8] sm:$0xff] }
  0x30   :  { %v103_v46 = vsub.f32 %v1081_v38, %v67_v25  ;;  %v105_v50 = vsub.f32 %v1105_v45, %v67_v25  ;;  %v107_v56 = vsub.f32 %v1124_v53, %v67_v25 }
  0x32   :  { %546 = vperm.xlu1 %878, %v536_v26   ;;  %541 = vperm.xlu0 %877, %v535_v27   ;;  %v85_v26 = vadd.f32 %v84_v22, %v83_v18  ;;  %v68_v27 = vmul.f32 0.03125, %v66_v23  ;;  %v179_v22 = vld [vmem:[%s1335_s1 + $0x10] sm:$0xff]  ;;  %v180_v23 = vld [vmem:[%s1335_s1 + $0x18] sm:$0xff] }
  0x34   :  { %v102_v42 = vsub.f32 %v1089_v40, %v68_v27  ;;  %v104_v47 = vsub.f32 %v1094_v41, %v68_v27  ;;  %v106_v51 = vsub.f32 %v1116_v49, %v68_v27 }
  0x36   :  { %556 = vperm.xlu1 %878, %v538_v28   ;;  %551 = vperm.xlu0 %877, %v537_v29   ;;  %v94_v28 = vadd.f32 %v93_v24, %v92_v20  ;;  %v95_v29 = vmul.f32 0.03125, %v85_v26  ;;  %v177_v20 = vld [vmem:[%s1335_s1] sm:$0xff]  ;;  %v183_v26 = vld [vmem:[%s1335_s1 + $0x30] sm:$0xff] }
  0x37   :  { %v181_v24 = vld [vmem:[%s1335_s1 + $0x20] sm:$0xff] }
  0x3a   :  { %731 = vperm.xlu1 %878, %v657_v30   ;;  %726 = vperm.xlu0 %877, %v656_v31   ;;  %v97_v30 = vmul.f32 %v67_v25, %v67_v25  ;;  %v96_v31 = vmul.f32 0.03125, %v94_v28  ;;  %v185_v28 = vld [vmem:[%s1335_s1 + $0x40] sm:$0xff] }
  0x3e   :  { %741 = vperm.xlu1 %878, %v659_v32   ;;  %736 = vperm.xlu0 %877, %v658_v33   ;;  %v98_v32 = vmul.f32 %v68_v27, %v68_v27  ;;  %v99_v33 = vsub.f32 %v95_v29, %v97_v30  ;;  %v186_v29 = vld [vmem:[%s1335_s1 + $0x48] sm:$0xff]  ;;  %v187_v30 = vld [vmem:[%s1335_s1 + $0x50] sm:$0xff] }
  0x42   :  { %771 = vperm.xlu1 %878, %v661_v34   ;;  %766 = vperm.xlu0 %877, %v660_v35   ;;  %v100_v34 = vsub.f32 %v96_v31, %v98_v32  ;;  %v137_v35 = vadd.f32 1e-06, %v99_v33  ;;  %v188_v31 = vld [vmem:[%s1335_s1 + $0x58] sm:$0xff]  ;;  %v189_v32 = vld [vmem:[%s1335_s1 + $0x60] sm:$0xff]  ;;  %v190_v33 = vld [vmem:[%s1335_s1 + $0x68] sm:$0xff] }
  0x44   :  { %879 = vrsqrt.f32 %v137_v35  ;;  %v192_v35 = vld [vmem:[%s1335_s1 + $0x78] sm:$0xff] }
  0x46   :  { %781 = vperm.xlu1 %878, %v663_v36   ;;  %776 = vperm.xlu0 %877, %v662_v39   ;;  %v138_v36 = vadd.f32 1e-06, %v100_v34  ;;  %v101_v39 = vsub.f32 %v1076_v37, %v67_v25  ;;  %v108_v37 = vsub.f32 %v1132_v57, %v68_v27  ;;  %v182_v25 = vld [vmem:[%s1335_s1 + $0x28] sm:$0xff]  ;;  %v184_v27 = vld [vmem:[%s1335_s1 + $0x38] sm:$0xff]  ;;  %v191_v34 = vld [vmem:[%s1335_s1 + $0x70] sm:$0xff] }
  0x48   :  { %881 = vrsqrt.f32 %v138_v36 }
  0x4e   :  { %v880_v48 = vpop.eup %879 }
  0x52   :  { %v882_v55 = vpop.eup %881 }
  0x81   :  { %v122_v43 = vpop.permute.xlu1 %121  ;;  %v112_v44 = vpop.permute.xlu0 %111 }
  0x82   :  { %v129_v52 = vmul.f32 %v112_v44, %v101_v39  ;;  %v130_v54 = vmul.f32 %v112_v44, %v102_v42  ;;  %v133_v61 = vmul.f32 %v122_v43, %v105_v50  ;;  %v134_v38 = vmul.f32 %v122_v43, %v106_v51 }
  0x84   :  { %v141_v62 = vmul.f32 %v880_v48, %v129_v52  ;;  %v142_v41 = vmul.f32 %v882_v55, %v130_v54  ;;  %v145_v5 = vmul.f32 %v880_v48, %v133_v61  ;;  %v146_v6 = vmul.f32 %v882_v55, %v134_v38 }
  0x85   :  { %v127_v58 = vpop.permute.xlu1 %126  ;;  %v117_v40 = vpop.permute.xlu0 %116 }
  0x86   :  { %v131_v59 = vmul.f32 %v117_v40, %v103_v46  ;;  %v132_v60 = vmul.f32 %v117_v40, %v104_v47  ;;  %v135_v63 = vmul.f32 %v127_v58, %v107_v56  ;;  %v136_v0 = vmul.f32 %v127_v58, %v108_v37 }
  0x88   :  { %v143_v45 = vmul.f32 %v880_v48, %v131_v59  ;;  %v144_v1 = vmul.f32 %v882_v55, %v132_v60  ;;  %v147_v7 = vmul.f32 %v880_v48, %v135_v63  ;;  %v148_v8 = vmul.f32 %v882_v55, %v136_v0 }
  0x89   :  { %v157_v49 = vpop.permute.xlu1 %156  ;;  %v152_v2 = vpop.permute.xlu0 %151 }
  0x8a   :  { %v1148_v3 = vadd.f32 %v157_v49, %v143_v45  ;;  %v1150_v4 = vadd.f32 %v157_v49, %v144_v1  ;;  %v1152_v53 = vadd.f32 %v152_v2, %v141_v62  ;;  %v1154_v57 = vadd.f32 %v152_v2, %v142_v41 }
  0x8c   :  { %v832_v9 = vpack.c.bf16 %v1150_v4, %v1154_v57  ;;  %v834_v10 = vpack.c.bf16 %v1148_v3, %v1152_v53 }
  0x8d   :  { %v167_v11 = vpop.permute.xlu1 %166  ;;  %v162_v12 = vpop.permute.xlu0 %161 }
  0x8e   :  { %v1160_v14 = vadd.f32 %v167_v11, %v147_v7  ;;  %v1162_v15 = vadd.f32 %v167_v11, %v148_v8  ;;  %v1164_v16 = vadd.f32 %v162_v12, %v145_v5  ;;  %v1166_v17 = vadd.f32 %v162_v12, %v146_v6  ;;  %833 = vmatprep.subr.bf16.mxu0 %v832_v9 }
  0x8f   :  { %835 = vmatpush1.bf16.msra.mxu0 %v834_v10 }
  0x90   :  { %v836_v18 = vpack.c.bf16 %v1162_v15, %v1166_v17  ;;  %v838_v19 = vpack.c.bf16 %v1160_v14, %v1164_v16 }
  0x91   :  { %v212_v42 = vpop.permute.xlu0 %211  ;;  %v217_v44 = vpop.permute.xlu1 %216 }
  0x92   :  { %837 = vmatprep.subr.bf16.mxu0 %v836_v18 }
  0x93   :  { %839 = vmatpush1.bf16.msra.mxu0 %v838_v19 }
  0x95   :  { %v222_v59 = vpop.permute.xlu0 %221  ;;  %v227_v38 = vpop.permute.xlu1 %226 }
  0x96   :  { %816 = vmatmul.mubr.msk.f32.vlgmr.msra.gmra.mrb[0].mxu0 %vm289_vm0, %v177_v20 }
  0x97   :  { %408 = vmatprep.mubr.f32.mxu0 %v912_v13 }
  0x99   :  { %v232_v9 = vpop.permute.xlu0 %231  ;;  %v237_v12 = vpop.permute.xlu1 %236 }
  0x9a   :  { %817 = vmatmul.mubr.msk.f32.gmra.mrb[2].mxu0 %vm289_vm0, %v178_v21 }
  0x9b   :  { %414 = vmatprep.mubr.f32.mxu0 %v912_v13 }
  0x9e   :  { %818 = vmatmul.mubr.msk.f32.gmra.mrb[4].mxu0 %vm289_vm0, %v179_v22 }
  0x9f   :  { %420 = vmatprep.mubr.f32.mxu0 %v912_v13 }
  0xa2   :  { %819 = vmatmul.mubr.msk.f32.gmra.mrb[6].mxu0 %vm289_vm0, %v180_v23 }
  0xa3   :  { %426 = vmatprep.mubr.f32.mxu0 %v912_v13 }
  0xa6   :  { %820 = vmatmul.mubr.msk.f32.gmra.mrb[8].mxu0 %vm289_vm0, %v181_v24 }
  0xa7   :  { %432 = vmatprep.mubr.f32.mxu0 %v912_v13 }
  0xaa   :  { %821 = vmatmul.mubr.msk.f32.gmra.mrb[10].mxu0 %vm289_vm0, %v182_v25 }
  0xab   :  { %438 = vmatprep.mubr.f32.mxu0 %v912_v13 }
  0xae   :  { %822 = vmatmul.mubr.msk.f32.gmra.mrb[12].mxu0 %vm289_vm0, %v183_v26 }
  0xaf   :  { %444 = vmatprep.mubr.f32.mxu0 %v912_v13 }
  0xb2   :  { %823 = vmatmul.mubr.msk.f32.gmra.mrb[14].mxu0 %vm289_vm0, %v184_v27 }
  0xb3   :  { %450 = vmatprep.mubr.f32.mxu0 %v912_v13 }
  0xb6   :  { %824 = vmatmul.mubr.msk.f32.gmra.mrb[16].mxu0 %vm289_vm0, %v185_v28 }
  0xb7   :  { %456 = vmatprep.mubr.f32.mxu0 %v912_v13 }
  0xba   :  { %825 = vmatmul.mubr.msk.f32.gmra.mrb[18].mxu0 %vm289_vm0, %v186_v29 }
  0xbb   :  { %462 = vmatprep.mubr.f32.mxu0 %v912_v13 }
  0xbe   :  { %826 = vmatmul.mubr.msk.f32.gmra.mrb[20].mxu0 %vm289_vm0, %v187_v30  ;;  %v242_v30 = vpop.permute.xlu0 %241 }
  0xbf   :  { %468 = vmatprep.mubr.f32.mxu0 %v912_v13 }
  0xc2   :  { %827 = vmatmul.mubr.msk.f32.gmra.mrb[22].mxu0 %vm289_vm0, %v188_v31 }
  0xc3   :  { %474 = vmatprep.mubr.f32.mxu0 %v912_v13 }
  0xc6   :  { %828 = vmatmul.mubr.msk.f32.gmra.mrb[24].mxu0 %vm289_vm0, %v189_v32 }
  0xc7   :  { %480 = vmatprep.mubr.f32.mxu0 %v912_v13 }
  0xca   :  { %829 = vmatmul.mubr.msk.f32.gmra.mrb[26].mxu0 %vm289_vm0, %v190_v33  ;;  %v247_v33 = vpop.permute.xlu1 %246 }
  0xcb   :  { %486 = vmatprep.mubr.f32.mxu0 %v912_v13 }
  0xce   :  { %830 = vmatmul.mubr.msk.f32.gmra.mrb[28].mxu0 %vm289_vm0, %v191_v34 }
  0xcf   :  { %492 = vmatprep.mubr.f32.mxu0 %v912_v13 }
  0xd2   :  { %831 = vmatmul.mubr.msk.f32.gmra.mrb[30].mxu0 %vm289_vm0, %v192_v35 }
 0x169   :  { %v404_v36 = vpop.f32.mrb[0].mxu0 }
 0x16a   :  { %v406_v39 = vpop.f32.mrb[1].mxu0  ;;  %v405_v43 = vadd.f32 %v404_v36, %v212_v42 }
 0x16b   :  { %v407_v46 = vadd.f32 %v406_v39, %v212_v42 }
 0x16c   :  { %v499_v52 = vmax.f32 %v405_v43, 0.0 }
 0x16d   :  { %v410_v47 = vpop.f32.mrb[2].mxu0  ;;  %v500_v55 = vmax.f32 %v407_v46, 0.0 }
 0x16e   :  { %v411_v48 = vadd.f32 %v410_v47, %v217_v44  ;;  %v412_v50 = vpop.f32.mrb[3].mxu0 }
 0x16f   :  { %v413_v51 = vadd.f32 %v412_v50, %v217_v44 }
 0x170   :  { %v501_v54 = vmax.f32 %v411_v48, 0.0 }
 0x171   :  { %v502_v56 = vmax.f32 %v413_v51, 0.0  ;;  %v416_v37 = vpop.f32.mrb[4].mxu0 }
 0x172   :  { %v418_v58 = vpop.f32.mrb[5].mxu0  ;;  %v842_v40 = vpack.c.bf16 %v501_v54, %v499_v52  ;;  %v417_v61 = vadd.f32 %v416_v37, %v222_v59  ;;  %v252_v52 = vpop.permute.xlu0 %251 }
 0x173   :  { %v840_v60 = vpack.c.bf16 %v502_v56, %v500_v55  ;;  %v419_v62 = vadd.f32 %v418_v58, %v222_v59  ;;  %v257_v56 = vpop.permute.xlu1 %256 }
 0x174   :  { %v503_v1 = vmax.f32 %v417_v61, 0.0 }
 0x175   :  { %v422_v41 = vpop.f32.mrb[6].mxu0  ;;  %841 = vmatprep.subr.bf16.mxu1 %v840_v60  ;;  %v504_v2 = vmax.f32 %v419_v62, 0.0 }
 0x176   :  { %v423_v63 = vadd.f32 %v422_v41, %v227_v38  ;;  %v424_v0 = vpop.f32.mrb[7].mxu0  ;;  %843 = vmatpush1.bf16.msra.mxu1 %v842_v40 }
 0x177   :  { %v425_v45 = vadd.f32 %v424_v0, %v227_v38 }
 0x178   :  { %v505_v49 = vmax.f32 %v423_v63, 0.0 }
 0x179   :  { %v506_v5 = vmax.f32 %v425_v45, 0.0  ;;  %v428_v6 = vpop.f32.mrb[8].mxu0 }
 0x17a   :  { %v846_v7 = vpack.c.bf16 %v505_v49, %v503_v1  ;;  %v430_v8 = vpop.f32.mrb[9].mxu0  ;;  %v429_v11 = vadd.f32 %v428_v6, %v232_v9  ;;  %v262_v1 = vpop.permute.xlu0 %261 }
 0x17b   :  { %v844_v10 = vpack.c.bf16 %v506_v5, %v504_v2  ;;  %v431_v18 = vadd.f32 %v430_v8, %v232_v9  ;;  %v267_v5 = vpop.permute.xlu1 %266 }
 0x17c   :  { %v507_v23 = vmax.f32 %v429_v11, 0.0 }
 0x17d   :  { %v434_v19 = vpop.f32.mrb[10].mxu0  ;;  %845 = vmatprep.subr.bf16.mxu1 %v844_v10  ;;  %v508_v25 = vmax.f32 %v431_v18, 0.0 }
 0x17e   :  { %v435_v20 = vadd.f32 %v434_v19, %v237_v12  ;;  %v436_v21 = vpop.f32.mrb[11].mxu0  ;;  %847 = vmatpush1.bf16.msra.mxu1 %v846_v7 }
 0x17f   :  { %v437_v22 = vadd.f32 %v436_v21, %v237_v12 }
 0x180   :  { %v509_v24 = vmax.f32 %v435_v20, 0.0 }
 0x181   :  { %v510_v26 = vmax.f32 %v437_v22, 0.0  ;;  %v440_v27 = vpop.f32.mrb[12].mxu0 }
 0x182   :  { %v850_v28 = vpack.c.bf16 %v509_v24, %v507_v23  ;;  %v442_v29 = vpop.f32.mrb[13].mxu0  ;;  %v441_v32 = vadd.f32 %v440_v27, %v242_v30  ;;  %v272_v23 = vpop.permute.xlu0 %271 }
 0x183   :  { %v848_v31 = vpack.c.bf16 %v510_v26, %v508_v25  ;;  %v443_v34 = vadd.f32 %v442_v29, %v242_v30  ;;  %v277_v26 = vpop.permute.xlu1 %276 }
 0x184   :  { %v511_v43 = vmax.f32 %v441_v32, 0.0 }
 0x185   :  { %v446_v35 = vpop.f32.mrb[14].mxu0  ;;  %849 = vmatprep.subr.bf16.mxu1 %v848_v31  ;;  %v512_v46 = vmax.f32 %v443_v34, 0.0 }
 0x186   :  { %v447_v36 = vadd.f32 %v446_v35, %v247_v33  ;;  %v448_v39 = vpop.f32.mrb[15].mxu0  ;;  %851 = vmatpush1.bf16.msra.mxu1 %v850_v28 }
 0x187   :  { %v449_v42 = vadd.f32 %v448_v39, %v247_v33 }
 0x188   :  { %v513_v44 = vmax.f32 %v447_v36, 0.0 }
 0x189   :  { %v514_v47 = vmax.f32 %v449_v42, 0.0  ;;  %v452_v48 = vpop.f32.mrb[16].mxu0 }
 0x18a   :  { %v854_v50 = vpack.c.bf16 %v513_v44, %v511_v43  ;;  %v454_v51 = vpop.f32.mrb[17].mxu0  ;;  %v453_v55 = vadd.f32 %v452_v48, %v252_v52  ;;  %v282_v43 = vpop.permute.xlu0 %281 }
 0x18b   :  { %v852_v54 = vpack.c.bf16 %v514_v47, %v512_v46  ;;  %v455_v37 = vadd.f32 %v454_v51, %v252_v52  ;;  %v287_v47 = vpop.permute.xlu1 %286 }
 0x18c   :  { %v515_v61 = vmax.f32 %v453_v55, 0.0 }
 0x18d   :  { %v458_v58 = vpop.f32.mrb[18].mxu0  ;;  %853 = vmatprep.subr.bf16.mxu1 %v852_v54  ;;  %v516_v62 = vmax.f32 %v455_v37, 0.0 }
 0x18e   :  { %v459_v40 = vadd.f32 %v458_v58, %v257_v56  ;;  %v460_v59 = vpop.f32.mrb[19].mxu0  ;;  %855 = vmatpush1.bf16.msra.mxu1 %v854_v50 }
 0x18f   :  { %v461_v60 = vadd.f32 %v460_v59, %v257_v56 }
 0x190   :  { %v517_v38 = vmax.f32 %v459_v40, 0.0 }
 0x191   :  { %v518_v41 = vmax.f32 %v461_v60, 0.0  ;;  %v464_v63 = vpop.f32.mrb[20].mxu0  ;;  %v531_v60 = vld [vmem:[%s1336_s2] sm:$0xff] }
 0x192   :  { %v858_v0 = vpack.c.bf16 %v517_v38, %v515_v61  ;;  %v466_v45 = vpop.f32.mrb[21].mxu0  ;;  %v465_v2 = vadd.f32 %v464_v63, %v262_v1  ;;  %v532_v61 = vld [vmem:[%s1336_s2 + $0x8] sm:$0xff]  ;;  %v533_v38 = vld [vmem:[%s1336_s2 + $0x10] sm:$0xff] }
 0x193   :  { %v856_v49 = vpack.c.bf16 %v518_v41, %v516_v62  ;;  %v467_v6 = vadd.f32 %v466_v45, %v262_v1  ;;  %v534_v62 = vld [vmem:[%s1336_s2 + $0x18] sm:$0xff]  ;;  %v542_v41 = vpop.permute.xlu0 %541  ;;  %s913_s2 = smov [#allocation2]  }
 0x194   :  { %v519_v11 = vmax.f32 %v465_v2, 0.0  ;;  %s805_s10 = sshll.u32 %s913_s2, 4  ;;  %s806_s10 = int_to_ptr.vmem [resolvable:$true] %s805_s10 }
 0x195   :  { %v470_v7 = vpop.f32.mrb[22].mxu0  ;;  %857 = vmatprep.subr.bf16.mxu1 %v856_v49  ;;  %v520_v18 = vmax.f32 %v467_v6, 0.0  ;;  %v547_v49 = vpop.permute.xlu1 %546  ;;  %s887_s7 = scalar_lea.vmem %s806_s10, 1024  ;;  %p892_p1 = scmp.lt.s32.totalorder %s806_s10, %s806_s10 }
 0x196   :  { %v471_v8 = vadd.f32 %v470_v7, %v267_v5  ;;  %v472_v9 = vpop.f32.mrb[23].mxu0  ;;  %859 = vmatpush1.bf16.msra.mxu1 %v858_v0  ;;  %p888_p0 = scmp.ne.s32.totalorder %s806_s10, %s887_s7  ;;  %p893_p2 = scmp.lt.s32.totalorder %s887_s7, %s887_s7 }
 0x197   :  { %v473_v10 = vadd.f32 %v472_v9, %v267_v5 }
 0x198   :  { %v521_v12 = vmax.f32 %v471_v8, 0.0  ;;  %p894_p3 = por %p893_p2, %p892_p1 }
 0x199   :  { %v522_v19 = vmax.f32 %v473_v10, 0.0  ;;  %v476_v20 = vpop.f32.mrb[24].mxu0  ;;  %v552_v10 = vpop.permute.xlu0 %551 }
 0x19a   :  { %v862_v21 = vpack.c.bf16 %v521_v12, %v519_v11  ;;  %v478_v22 = vpop.f32.mrb[25].mxu0  ;;  %v477_v25 = vadd.f32 %v476_v20, %v272_v23  ;;  %p895_p4 = pnand %p894_p3, %p888_p0 }
 0x19b   :  { %v860_v24 = vpack.c.bf16 %v522_v19, %v520_v18  ;;  %v479_v27 = vadd.f32 %v478_v22, %v272_v23 }
 0x19c   :  { %v523_v32 = vmax.f32 %v477_v25, 0.0  ;;  %v557_v25 = vpop.permute.xlu1 %556 }
 0x19d   :  { %v482_v28 = vpop.f32.mrb[26].mxu0  ;;  %861 = vmatprep.subr.bf16.mxu1 %v860_v24  ;;  %v524_v34 = vmax.f32 %v479_v27, 0.0 }
 0x19e   :  { %v483_v29 = vadd.f32 %v482_v28, %v277_v26  ;;  %v484_v30 = vpop.f32.mrb[27].mxu0  ;;  %863 = vmatpush1.bf16.msra.mxu1 %v862_v21 }
 0x19f   :  { %v485_v31 = vadd.f32 %v484_v30, %v277_v26 }
 0x1a0   :  { %v525_v33 = vmax.f32 %v483_v29, 0.0 }
 0x1a1   :  { %v526_v35 = vmax.f32 %v485_v31, 0.0  ;;  %v488_v36 = vpop.f32.mrb[28].mxu0 }
 0x1a2   :  { %v866_v39 = vpack.c.bf16 %v525_v33, %v523_v32  ;;  %v490_v42 = vpop.f32.mrb[29].mxu0  ;;  %v489_v46 = vadd.f32 %v488_v36, %v282_v43 }
 0x1a3   :  { %v864_v44 = vpack.c.bf16 %v526_v35, %v524_v34  ;;  %v491_v48 = vadd.f32 %v490_v42, %v282_v43 }
 0x1a4   :  { %v527_v55 = vmax.f32 %v489_v46, 0.0 }
 0x1a5   :  { %v494_v50 = vpop.f32.mrb[30].mxu0  ;;  %865 = vmatprep.subr.bf16.mxu1 %v864_v44  ;;  %v528_v37 = vmax.f32 %v491_v48, 0.0 }
 0x1a6   :  { %v495_v51 = vadd.f32 %v494_v50, %v287_v47  ;;  %v496_v52 = vpop.f32.mrb[31].mxu0  ;;  %867 = vmatpush1.bf16.msra.mxu1 %v866_v39 }
 0x1a7   :  { %v497_v54 = vadd.f32 %v496_v52, %v287_v47 }
 0x1a8   :  { %v529_v56 = vmax.f32 %v495_v51, 0.0 }
 0x1a9   :  { %v530_v58 = vmax.f32 %v497_v54, 0.0 }
 0x1aa   :  { %v870_v40 = vpack.c.bf16 %v529_v56, %v527_v55 }
 0x1ab   :  { %v868_v59 = vpack.c.bf16 %v530_v58, %v528_v37 }
 0x1ad   :  { %869 = vmatprep.subr.bf16.mxu1 %v868_v59 }
 0x1ae   :  { %871 = vmatpush1.bf16.msra.mxu1 %v870_v40 }
 0x1b1   :  { %624 = vmatmul.mubr.f32.vlgmr.msra.gmra.mrb[0].mxu1 %v531_v60 }
 0x1b2   :  { %629 = vmatprep.mubr.f32.mxu1 %v912_v13 }
 0x1b5   :  { %630 = vmatmul.mubr.f32.gmra.mrb[2].mxu1 %v532_v61 }
 0x1b6   :  { %635 = vmatprep.mubr.f32.mxu1 %v912_v13 }
 0x1b9   :  { %636 = vmatmul.mubr.f32.gmra.mrb[4].mxu1 %v533_v38 }
 0x1ba   :  { %641 = vmatprep.mubr.f32.mxu1 %v912_v13 }
 0x1bd   :  { %642 = vmatmul.mubr.f32.gmra.mrb[6].mxu1 %v534_v62 }
 0x284   :  { %v625_v63 = vpop.f32.mrb[0].mxu1 }
 0x285   :  { %v626_v0 = vadd.f32 %v625_v63, %v542_v41  ;;  %v627_v45 = vpop.f32.mrb[1].mxu1 }
 0x286   :  { %v628_v1 = vadd.f32 %v627_v45, %v542_v41 }
 0x287   :  { %v1267_v5 = vadd.f32 %v626_v0, %v1152_v53 }
 0x288   :  { %v631_v2 = vpop.f32.mrb[2].mxu1  ;;  %v1270_v8 = vadd.f32 %v628_v1, %v1154_v57 }
 0x289   :  { %v632_v6 = vadd.f32 %v631_v2, %v547_v49  ;;  %v633_v7 = vpop.f32.mrb[3].mxu1  ;;  %v684_v18 = vmul.f32 %v1267_v5, %v1267_v5 }
 0x28a   :  { %v634_v13 = vadd.f32 %v633_v7, %v547_v49 }
 0x28b   :  { %v1273_v9 = vadd.f32 %v632_v6, %v1148_v3  ;;  %v685_v3 = vmul.f32 %v1270_v8, %v1270_v8 }
 0x28c   :  { %v1276_v11 = vadd.f32 %v634_v13, %v1150_v4  ;;  %v637_v12 = vpop.f32.mrb[4].mxu1 }
 0x28d   :  { %v664_v53 = vadd.f32 %v1273_v9, %v1267_v5  ;;  %v686_v19 = vmul.f32 %v1273_v9, %v1273_v9  ;;  %v638_v57 = vadd.f32 %v637_v12, %v552_v10  ;;  %v639_v20 = vpop.f32.mrb[5].mxu1  ;;  %v727_v12 = vpop.permute.xlu0 %726 }
 0x28e   :  { %v673_v21 = vadd.f32 %v1276_v11, %v1270_v8  ;;  %v687_v4 = vmul.f32 %v1276_v11, %v1276_v11  ;;  %v640_v22 = vadd.f32 %v639_v20, %v552_v10  ;;  %v732_v10 = vpop.permute.xlu1 %731 }
 0x28f   :  { %v692_v23 = vadd.f32 %v686_v19, %v684_v18  ;;  %v1291_v24 = vadd.f32 %v638_v57, %v1164_v16 }
 0x290   :  { %v701_v26 = vadd.f32 %v687_v4, %v685_v3  ;;  %v1294_v27 = vadd.f32 %v640_v22, %v1166_v17  ;;  %v643_v28 = vpop.f32.mrb[6].mxu1 }
 0x291   :  { %v665_v29 = vadd.f32 %v664_v53, %v1291_v24  ;;  %v688_v30 = vmul.f32 %v1291_v24, %v1291_v24  ;;  %v644_v31 = vadd.f32 %v643_v28, %v557_v25  ;;  %v645_v32 = vpop.f32.mrb[7].mxu1 }
 0x292   :  { %v674_v33 = vadd.f32 %v673_v21, %v1294_v27  ;;  %v689_v34 = vmul.f32 %v1294_v27, %v1294_v27  ;;  %v646_v16 = vadd.f32 %v645_v32, %v557_v25 }
 0x293   :  { %v693_v35 = vadd.f32 %v692_v23, %v688_v30  ;;  %v1303_v36 = vadd.f32 %v644_v31, %v1160_v14  ;;  %v742_v31 = vpop.permute.xlu1 %741 }
 0x294   :  { %v702_v17 = vadd.f32 %v701_v26, %v689_v34  ;;  %v1306_v39 = vadd.f32 %v646_v16, %v1162_v15 }
 0x295   :  { %v666_v42 = vadd.f32 %v665_v29, %v1303_v36  ;;  %v690_v43 = vmul.f32 %v1303_v36, %v1303_v36 }
 0x296   :  { %v675_v44 = vadd.f32 %v674_v33, %v1306_v39  ;;  %v691_v46 = vmul.f32 %v1306_v39, %v1306_v39 }
 0x297   :  { %v667_v47 = vrot.slane %v666_v42, 4  ;;  %v694_v48 = vadd.f32 %v693_v35, %v690_v43 }
 0x298   :  { %v676_v50 = vrot.slane %v675_v44, 4  ;;  %v703_v51 = vadd.f32 %v702_v17, %v691_v46 }
 0x299   :  { %v668_v14 = vadd.f32 %v667_v47, %v666_v42  ;;  %v695_v52 = vrot.slane %v694_v48, 4 }
 0x29a   :  { %v677_v54 = vadd.f32 %v676_v50, %v675_v44  ;;  %v704_v55 = vrot.slane %v703_v51, 4 }
 0x29b   :  { %v669_v15 = vrot.slane %v668_v14, 2  ;;  %v696_v56 = vadd.f32 %v695_v52, %v694_v48 }
 0x29c   :  { %v678_v37 = vrot.slane %v677_v54, 2  ;;  %v705_v58 = vadd.f32 %v704_v55, %v703_v51 }
 0x29d   :  { %v670_v40 = vadd.f32 %v669_v15, %v668_v14  ;;  %v697_v59 = vrot.slane %v696_v56, 2 }
 0x29e   :  { %v679_v60 = vadd.f32 %v678_v37, %v677_v54  ;;  %v706_v61 = vrot.slane %v705_v58, 2 }
 0x29f   :  { %v671_v38 = vrot.slane %v670_v40, 1  ;;  %v698_v62 = vadd.f32 %v697_v59, %v696_v56 }
 0x2a0   :  { %v680_v41 = vrot.slane %v679_v60, 1  ;;  %v707_v63 = vadd.f32 %v706_v61, %v705_v58 }
 0x2a1   :  { %v672_v0 = vadd.f32 %v671_v38, %v670_v40  ;;  %v699_v45 = vrot.slane %v698_v62, 1 }
 0x2a2   :  { %v681_v1 = vadd.f32 %v680_v41, %v679_v60  ;;  %v708_v49 = vrot.slane %v707_v63, 1 }
 0x2a3   :  { %v682_v2 = vmul.f32 0.03125, %v672_v0  ;;  %v700_v6 = vadd.f32 %v699_v45, %v698_v62 }
 0x2a4   :  { %v683_v7 = vmul.f32 0.03125, %v681_v1  ;;  %v709_v13 = vadd.f32 %v708_v49, %v707_v63 }
 0x2a5   :  { %v710_v18 = vmul.f32 0.03125, %v700_v6  ;;  %v712_v53 = vmul.f32 %v682_v2, %v682_v2  ;;  %v716_v19 = vsub.f32 %v1267_v5, %v682_v2  ;;  %v718_v57 = vsub.f32 %v1273_v9, %v682_v2  ;;  %v737_v9 = vpop.permute.xlu0 %736 }
 0x2a6   :  { %v720_v20 = vsub.f32 %v1291_v24, %v682_v2  ;;  %v722_v3 = vsub.f32 %v1303_v36, %v682_v2  ;;  %v711_v21 = vmul.f32 0.03125, %v709_v13  ;;  %v713_v4 = vmul.f32 %v683_v7, %v683_v7  ;;  %v772_v24 = vpop.permute.xlu1 %771 }
 0x2a7   :  { %v714_v22 = vsub.f32 %v710_v18, %v712_v53  ;;  %v717_v23 = vsub.f32 %v1270_v8, %v683_v7  ;;  %v719_v26 = vsub.f32 %v1276_v11, %v683_v7  ;;  %v721_v29 = vsub.f32 %v1294_v27, %v683_v7 }
 0x2a8   :  { %v715_v25 = vsub.f32 %v711_v21, %v713_v4  ;;  %v723_v30 = vsub.f32 %v1306_v39, %v683_v7  ;;  %v744_v33 = vmul.f32 %v727_v12, %v716_v19  ;;  %v746_v34 = vmul.f32 %v732_v10, %v718_v57 }
 0x2a9   :  { %v752_v28 = vadd.f32 1e-06, %v714_v22  ;;  %v767_v32 = vpop.permute.xlu0 %766  ;;  %v748_v16 = vmul.f32 %v737_v9, %v720_v20  ;;  %v750_v35 = vmul.f32 %v742_v31, %v722_v3  ;;  %v745_v36 = vmul.f32 %v727_v12, %v717_v23 }
 0x2aa   :  { %v753_v5 = vadd.f32 1e-06, %v715_v25  ;;  %v747_v17 = vmul.f32 %v732_v10, %v719_v26  ;;  %v749_v11 = vmul.f32 %v737_v9, %v721_v29  ;;  %v751_v42 = vmul.f32 %v742_v31, %v723_v30  ;;  %v782_v47 = vpop.permute.xlu1 %781 }
 0x2ab   :  { %883 = vrsqrt.f32 %v752_v28 }
 0x2ac   :  { %885 = vrsqrt.f32 %v753_v5 }
 0x2ad   :  { %v777_v48 = vpop.permute.xlu0 %776 }
 0x2b5   :  { %v884_v8 = vpop.eup %883 }
 0x2b6   :  { %v886_v43 = vpop.eup %885  ;;  %v756_v27 = vmul.f32 %v884_v8, %v744_v33  ;;  %v758_v44 = vmul.f32 %v884_v8, %v746_v34  ;;  %v760_v39 = vmul.f32 %v884_v8, %v748_v16  ;;  %v762_v46 = vmul.f32 %v884_v8, %v750_v35 }
 0x2b7   :  { %v757_v50 = vmul.f32 %v886_v43, %v745_v36  ;;  %v759_v51 = vmul.f32 %v886_v43, %v747_v17  ;;  %v761_v14 = vmul.f32 %v886_v43, %v749_v11  ;;  %v763_v52 = vmul.f32 %v886_v43, %v751_v42 }
 0x2b8   :  { %v784_v54 = vadd.f32 %v767_v32, %v756_v27  ;;  %v786_v55 = vadd.f32 %v772_v24, %v758_v44  ;;  %v788_v15 = vadd.f32 %v777_v48, %v760_v39  ;;  %v790_v56 = vadd.f32 %v782_v47, %v762_v46 }
 0x2b9   :  { %v785_v37 = vadd.f32 %v767_v32, %v757_v50  ;;  %v787_v58 = vadd.f32 %v772_v24, %v759_v51  ;;  %v789_v40 = vadd.f32 %v777_v48, %v761_v14  ;;  %v791_v59 = vadd.f32 %v782_v47, %v763_v52 }
 0x2ba   :  { %792 = vst [vmem:[#allocation2] sm:$0xff] %v784_v54  ;;  %794 = vst [vmem:[#allocation2 + $0x10] sm:$0xff] %v786_v55 }
 0x2bb   :  { %796 = vst [vmem:[#allocation2 + $0x20] sm:$0xff] %v788_v15  ;;  %798 = vst [vmem:[#allocation2 + $0x30] sm:$0xff] %v790_v56 }
 0x2bc   :  { %793 = vst [vmem:[#allocation2 + $0x8] sm:$0xff] %v785_v37  ;;  %795 = vst [vmem:[#allocation2 + $0x18] sm:$0xff] %v787_v58 }
 0x2bd   :  { %797 = vst [vmem:[#allocation2 + $0x28] sm:$0xff] %v789_v40  ;;  %799 = vst [vmem:[#allocation2 + $0x38] sm:$0xff] %v791_v59 }
 0x2be   :  { %898 = shalt.err (!%p895_p4)
}
 0x2bf   :  { %s899_s12 = scalar_lea.hbm %s1343_s9, 1024 }
 0x2c0   :  { %p900_p5 = scmp.ne.s32.totalorder %s1343_s9, %s899_s12  ;;  %p903_p6 = scmp.lt.u32.totalorder %s899_s12, %s1343_s9 }
 0x2c2   :  { %p905_p7 = pnand %p903_p6, %p900_p5 }
 0x2c4   :  { %908 = shalt.err (!%p905_p7)
}
 0x2c5   :  { %s914_s8 = smov 256   ;;  %s915_s17 = smov 16  }
 0x2c6   :  { %811 = dma.vmem_to_hbm [thread:$0]  %s806_s10, 1024, %s1343_s9, [#allocation3], %s914_s8, %s914_s8, %s915_s17  }
 0x2c7   :  { %909 = dma.done.wait [#allocation3], 1024  }
 0x2c8   :  { %910 = vsyncadd [#allocation3], 4294966272 }
 0x2c9   :  { %815 = vsyncpa [#allocation3], 1 }

</bundles_post_ra>
